<compile_context>
chip_gen: v7x
topology: tpu7x:2x2x1
jax: 0.10.0
libtpu: 0.0.40
codegen_flags: <defaults>
</compile_context>

<pallas_src>
import jax
import jax.numpy as jnp
import numpy as np
from jax.experimental import pallas as pl
from jax.experimental.pallas import tpu as pltpu  # noqa: F401  (TPU backend)

# ---------------- configuration (small shapes, consistent with the module) ---
B = 2            # batch
IH, IW = 4, 4    # image_size of this transformer stage
N = IH * IW      # sequence length = 16
INP = 32         # input channels
OUP = 32         # output channels
HEADS = 2
DIM_HEAD = 32
INNER = HEADS * DIM_HEAD       # 64
SCALE = DIM_HEAD ** (-0.5)
BN = B * N


# ---------------- Pallas kernel ----------------
def attention_kernel(x_ref, wq_ref, wk_ref, wv_ref, bias_ref, wout_ref,
                     bout_ref, o_ref):
    # x_ref:    (B*N, INP)        whole batch, tokens on the row (sublane) axis
    # wq/wk/wv: (HEADS, INP, D)   per-head projection weights (leading head axis)
    # bias_ref: (HEADS, N, N)     pre-gathered relative position bias
    # wout_ref: (HEADS, D, OUP)   per-head slice of the output projection
    # bout_ref: (1, OUP)          output projection bias
    # o_ref:    (B*N, OUP)
    x = x_ref[...]                                # hoisted once, reused per head

    acc = jnp.zeros((BN, OUP), dtype=jnp.float32)
    for h in range(HEADS):                        # static unroll, HEADS is small
        # Projections over the full batch (MXU; rows = B*N, leading-dim index).
        q = jnp.dot(x, wq_ref[h], preferred_element_type=jnp.float32)   # (B*N, D)
        k = jnp.dot(x, wk_ref[h], preferred_element_type=jnp.float32)
        v = jnp.dot(x, wv_ref[h], preferred_element_type=jnp.float32)
        # Sublane-only reshape (B*N, D) -> (B, N, D); lane (last) dim untouched.
        q3 = q.reshape(B, N, DIM_HEAD)
        k3 = k.reshape(B, N, DIM_HEAD)
        v3 = v.reshape(B, N, DIM_HEAD)

        # Batched q @ k^T over the batch dim; scale + relative-position bias
        # applied to the smaller (B, N, N) logits tensor in one expression.
        s = jnp.einsum("bnd,bmd->bnm", q3, k3,
                       preferred_element_type=jnp.float32)              # (B, N, N)
        s = s * SCALE + bias_ref[h]                # broadcast over batch

        # Numerically-stable softmax over the last axis (f32 throughout);
        # exp and the approximate reciprocal both go to the EUP slot.
        s = s - jnp.max(s, axis=-1, keepdims=True)
        p = jnp.exp(s)
        denom = jnp.sum(p, axis=-1, keepdims=True)
        attn = p * pl.reciprocal(denom, approx=True)

        # attn @ v, then accumulate this head's share of the output projection
        # (replaces concat-then-project; keeps the epilogue on the MXU path).
        oh = jnp.einsum("bnm,bmd->bnd", attn, v3,
                        preferred_element_type=jnp.float32)             # (B, N, D)
        acc = acc + jnp.dot(oh.reshape(BN, DIM_HEAD), wout_ref[h],
                            preferred_element_type=jnp.float32)         # (B*N, OUP)

    o_ref[...] = acc + bout_ref[...]              # broadcast (1, OUP) bias
    # TODO(synk): nn.Dropout(dropout=0.0) is identity in eval mode — omitted.
    # TODO(synk): at real CoAtNet sizes (N = 196..3136) this should be tiled
    # flash-style over a kv grid axis with bf16 MXU operands, lane-dense output
    # (last dim >= 128) and per-tile bias DMA so the O(N^2) bias never has to
    # sit whole in VMEM (v7x has only 64 MiB).


@jax.jit
def attention_pallas(x, w_qkv, rel_bias, w_out, b_out):
    """x: (B, N, INP); w_qkv: (INP, 3*INNER); rel_bias: (HEADS, N, N);
    w_out: (INNER, OUP); b_out: (OUP,)."""
    # Pre-split weights in the wrapper so the kernel never lane-slices:
    # qkv columns are ordered (q | k | v), each heads-major ('b n (h d)').
    w_q, w_k, w_v = jnp.split(w_qkv, 3, axis=-1)              # (INP, INNER) each

    def per_head_in(w):          # (INP, H*D) -> (H, INP, D)
        return jnp.transpose(w.reshape(INP, HEADS, DIM_HEAD), (1, 0, 2))

    wq_h, wk_h, wv_h = map(per_head_in, (w_q, w_k, w_v))
    wout_h = w_out.reshape(HEADS, DIM_HEAD, OUP)              # rows are h-major
    x2d = x.reshape(BN, INP)
    bout2d = b_out.reshape(1, OUP)

    out2d = pl.pallas_call(
        attention_kernel,
        out_shape=jax.ShapeDtypeStruct((BN, OUP), jnp.float32),
    )(x2d, wq_h, wk_h, wv_h, rel_bias, wout_h, bout2d)
    return out2d.reshape(B, N, OUP)


# ---------------- relative position bias (glue, mirrors __init__/forward) ----
def build_relative_index(ih, iw):
    ch, cw = np.meshgrid(np.arange(ih), np.arange(iw), indexing="ij")
    coords = np.stack([ch, cw]).reshape(2, -1)                  # (2, n)
    rel = coords[:, :, None] - coords[:, None, :]               # (2, n, n)
    rel[0] += ih - 1
    rel[1] += iw - 1
    rel[0] *= 2 * iw - 1
    rel = np.transpose(rel, (1, 2, 0))                          # (n, n, 2)
    return rel.sum(-1).reshape(-1)                              # (n*n,)


def gather_relative_bias(table, rel_index):
    # table: ((2ih-1)*(2iw-1), heads), rel_index: (n*n,)
    rb = table[rel_index]                                       # (n*n, heads)
    rb = rb.reshape(N, N, HEADS)
    return jnp.transpose(rb, (2, 0, 1))                         # (heads, n, n)


# ---------------- pure-JAX reference ----------------
def attention_ref(x, w_qkv, rel_bias, w_out, b_out):
    qkv = x @ w_qkv                                             # (B, N, 3*INNER)
    q, k, v = jnp.split(qkv, 3, axis=-1)

    def to_heads(t):
        return jnp.transpose(t.reshape(B, N, HEADS, DIM_HEAD), (0, 2, 1, 3))

    q, k, v = map(to_heads, (q, k, v))                          # (B, H, N, D)
    dots = jnp.einsum("bhnd,bhmd->bhnm", q, k) * SCALE
    dots = dots + rel_bias[None]                                # (1, H, N, N)
    attn = jax.nn.softmax(dots, axis=-1)
    out = jnp.einsum("bhnm,bhmd->bhnd", attn, v)
    out = jnp.transpose(out, (0, 2, 1, 3)).reshape(B, N, INNER)
    return out @ w_out + b_out


# ---------------- main ----------------
if __name__ == "__main__":
    key = jax.random.PRNGKey(0)
    kx, kq, kt, ko, kb = jax.random.split(key, 5)

    x = jax.random.normal(kx, (B, N, INP), dtype=jnp.float32)
    # nn.Linear weights (synthetic deterministic init; stored as (in, out)).
    w_qkv = jax.random.normal(kq, (INP, 3 * INNER), dtype=jnp.float32) * 0.05
    w_out = jax.random.normal(ko, (INNER, OUP), dtype=jnp.float32) * 0.05
    b_out = jax.random.normal(kb, (OUP,), dtype=jnp.float32) * 0.05
    # relative_bias_table: module inits to zeros; use small random values so
    # the bias path is actually exercised (deterministic either way).
    rel_table = jax.random.normal(kt, ((2 * IH - 1) * (2 * IW - 1), HEADS),
                                  dtype=jnp.float32) * 0.1

    rel_index = jnp.asarray(build_relative_index(IH, IW), dtype=jnp.int32)
    rel_bias = gather_relative_bias(rel_table, rel_index)       # (HEADS, N, N)

    out = attention_pallas(x, w_qkv, rel_bias, w_out, b_out)
    out = jax.block_until_ready(out)

    ref = attention_ref(x, w_qkv, rel_bias, w_out, b_out)
    # Tolerance accounts for the approximate EUP reciprocal in the softmax.
    np.testing.assert_allclose(np.asarray(out), np.asarray(ref),
                               rtol=2e-2, atol=2e-2)
    print("KERNEL_OK")
</pallas_src>

<mosaic_0001>
module attributes {stable_mosaic.version = 11 : i64} {
  func.func @attention_kernel(%arg0: memref<32x32xf32, #tpu.memory_space<vmem>>, %arg1: memref<2x32x32xf32, #tpu.memory_space<vmem>>, %arg2: memref<2x32x32xf32, #tpu.memory_space<vmem>>, %arg3: memref<2x32x32xf32, #tpu.memory_space<vmem>>, %arg4: memref<2x16x16xf32, #tpu.memory_space<vmem>>, %arg5: memref<2x32x32xf32, #tpu.memory_space<vmem>>, %arg6: memref<1x32xf32, #tpu.memory_space<vmem>>, %arg7: memref<32x32xf32, #tpu.memory_space<vmem>>) attributes {dimension_semantics = [], scalar_prefetch = 0 : i64, scratch_operands = 0 : i64, tpu.core_type = #tpu.core_type<tc>} {
    %c0 = arith.constant 0 : index
    %c0_0 = arith.constant 0 : index
    %0 = vector.load %arg0[%c0, %c0_0] : memref<32x32xf32, #tpu.memory_space<vmem>>, vector<32x32xf32>
    %cst = arith.constant 0.000000e+00 : f32
    %1 = vector.broadcast %cst : f32 to vector<32x32xf32>
    %c0_1 = arith.constant 0 : index
    %c0_2 = arith.constant 0 : index
    %c0_3 = arith.constant 0 : index
    %2 = vector.load %arg1[%c0_1, %c0_2, %c0_3] : memref<2x32x32xf32, #tpu.memory_space<vmem>>, vector<1x32x32xf32>
    %3 = vector.shape_cast %2 : vector<1x32x32xf32> to vector<32x32xf32>
    %cst_4 = arith.constant dense<0.000000e+00> : vector<32x32xf32>
    %4 = tpu.matmul %0, %3, %cst_4 {dimension_numbers = #tpu.dot_dimension_numbers<[1], [0], [0], [1], [0, 0, 1, 1], [], []>} : vector<32x32xf32>, vector<32x32xf32>, vector<32x32xf32> -> vector<32x32xf32>
    %c0_5 = arith.constant 0 : index
    %c0_6 = arith.constant 0 : index
    %c0_7 = arith.constant 0 : index
    %5 = vector.load %arg2[%c0_5, %c0_6, %c0_7] : memref<2x32x32xf32, #tpu.memory_space<vmem>>, vector<1x32x32xf32>
    %6 = vector.shape_cast %5 : vector<1x32x32xf32> to vector<32x32xf32>
    %cst_8 = arith.constant dense<0.000000e+00> : vector<32x32xf32>
    %7 = tpu.matmul %0, %6, %cst_8 {dimension_numbers = #tpu.dot_dimension_numbers<[1], [0], [0], [1], [0, 0, 1, 1], [], []>} : vector<32x32xf32>, vector<32x32xf32>, vector<32x32xf32> -> vector<32x32xf32>
    %c0_9 = arith.constant 0 : index
    %c0_10 = arith.constant 0 : index
    %c0_11 = arith.constant 0 : index
    %8 = vector.load %arg3[%c0_9, %c0_10, %c0_11] : memref<2x32x32xf32, #tpu.memory_space<vmem>>, vector<1x32x32xf32>
    %9 = vector.shape_cast %8 : vector<1x32x32xf32> to vector<32x32xf32>
    %cst_12 = arith.constant dense<0.000000e+00> : vector<32x32xf32>
    %10 = tpu.matmul %0, %9, %cst_12 {dimension_numbers = #tpu.dot_dimension_numbers<[1], [0], [0], [1], [0, 0, 1, 1], [], []>} : vector<32x32xf32>, vector<32x32xf32>, vector<32x32xf32> -> vector<32x32xf32>
    %11 = vector.shape_cast %4 : vector<32x32xf32> to vector<2x16x32xf32>
    %12 = vector.shape_cast %7 : vector<32x32xf32> to vector<2x16x32xf32>
    %13 = vector.shape_cast %10 : vector<32x32xf32> to vector<2x16x32xf32>
    "tpu.trace_start"() <{level = 10 : i32, message = "bnd,bmd->bnm"}> : () -> ()
    %cst_13 = arith.constant dense<0.000000e+00> : vector<2x16x16xf32>
    %14 = tpu.matmul %11, %12, %cst_13 {dimension_numbers = #tpu.dot_dimension_numbers<[2], [2], [1], [1], [0, 0, 0, 1, 1, 1], [0], [0]>} : vector<2x16x32xf32>, vector<2x16x32xf32>, vector<2x16x16xf32> -> vector<2x16x16xf32>
    "tpu.trace_stop"() : () -> ()
    %cst_14 = arith.constant 0.176776692 : f32
    %15 = vector.broadcast %cst_14 : f32 to vector<2x16x16xf32>
    %16 = arith.mulf %14, %15 : vector<2x16x16xf32>
    %c0_15 = arith.constant 0 : index
    %c0_16 = arith.constant 0 : index
    %c0_17 = arith.constant 0 : index
    %17 = vector.load %arg4[%c0_15, %c0_16, %c0_17] : memref<2x16x16xf32, #tpu.memory_space<vmem>>, vector<1x16x16xf32>
    %18 = vector.shape_cast %17 : vector<1x16x16xf32> to vector<16x16xf32>
    %19 = vector.shape_cast %18 : vector<16x16xf32> to vector<1x16x16xf32>
    %20 = vector.broadcast %19 : vector<1x16x16xf32> to vector<2x16x16xf32>
    %21 = arith.addf %16, %20 : vector<2x16x16xf32>
    %cst_18 = arith.constant dense<0xFF800000> : vector<2x16xf32>
    %22 = vector.multi_reduction <maximumf>, %21, %cst_18 [2] : vector<2x16x16xf32> to vector<2x16xf32>
    %23 = vector.shape_cast %22 : vector<2x16xf32> to vector<2x16x1xf32>
    %24 = vector.broadcast %23 : vector<2x16x1xf32> to vector<2x16x16xf32>
    %25 = arith.subf %21, %24 : vector<2x16x16xf32>
    %26 = math.exp %25 : vector<2x16x16xf32>
    %cst_19 = arith.constant dense<0.000000e+00> : vector<2x16xf32>
    %27 = vector.multi_reduction <add>, %26, %cst_19 [2] : vector<2x16x16xf32> to vector<2x16xf32>
    %28 = vector.shape_cast %27 : vector<2x16xf32> to vector<2x16x1xf32>
    %29 = tpu.reciprocal %28 {approx = true} : vector<2x16x1xf32> -> vector<2x16x1xf32>
    %30 = vector.broadcast %29 : vector<2x16x1xf32> to vector<2x16x16xf32>
    %31 = arith.mulf %26, %30 : vector<2x16x16xf32>
    "tpu.trace_start"() <{level = 10 : i32, message = "bnm,bmd->bnd"}> : () -> ()
    %cst_20 = arith.constant dense<0.000000e+00> : vector<2x16x32xf32>
    %32 = tpu.matmul %31, %13, %cst_20 {dimension_numbers = #tpu.dot_dimension_numbers<[2], [1], [1], [2], [0, 0, 0, 1, 1, 2], [0], [0]>} : vector<2x16x16xf32>, vector<2x16x32xf32>, vector<2x16x32xf32> -> vector<2x16x32xf32>
    "tpu.trace_stop"() : () -> ()
    %33 = vector.shape_cast %32 : vector<2x16x32xf32> to vector<32x32xf32>
    %c0_21 = arith.constant 0 : index
    %c0_22 = arith.constant 0 : index
    %c0_23 = arith.constant 0 : index
    %34 = vector.load %arg5[%c0_21, %c0_22, %c0_23] : memref<2x32x32xf32, #tpu.memory_space<vmem>>, vector<1x32x32xf32>
    %35 = vector.shape_cast %34 : vector<1x32x32xf32> to vector<32x32xf32>
    %cst_24 = arith.constant dense<0.000000e+00> : vector<32x32xf32>
    %36 = tpu.matmul %33, %35, %cst_24 {dimension_numbers = #tpu.dot_dimension_numbers<[1], [0], [0], [1], [0, 0, 1, 1], [], []>} : vector<32x32xf32>, vector<32x32xf32>, vector<32x32xf32> -> vector<32x32xf32>
    %37 = arith.addf %1, %36 : vector<32x32xf32>
    %c1 = arith.constant 1 : index
    %c0_25 = arith.constant 0 : index
    %c0_26 = arith.constant 0 : index
    %38 = vector.load %arg1[%c1, %c0_25, %c0_26] : memref<2x32x32xf32, #tpu.memory_space<vmem>>, vector<1x32x32xf32>
    %39 = vector.shape_cast %38 : vector<1x32x32xf32> to vector<32x32xf32>
    %cst_27 = arith.constant dense<0.000000e+00> : vector<32x32xf32>
    %40 = tpu.matmul %0, %39, %cst_27 {dimension_numbers = #tpu.dot_dimension_numbers<[1], [0], [0], [1], [0, 0, 1, 1], [], []>} : vector<32x32xf32>, vector<32x32xf32>, vector<32x32xf32> -> vector<32x32xf32>
    %c1_28 = arith.constant 1 : index
    %c0_29 = arith.constant 0 : index
    %c0_30 = arith.constant 0 : index
    %41 = vector.load %arg2[%c1_28, %c0_29, %c0_30] : memref<2x32x32xf32, #tpu.memory_space<vmem>>, vector<1x32x32xf32>
    %42 = vector.shape_cast %41 : vector<1x32x32xf32> to vector<32x32xf32>
    %cst_31 = arith.constant dense<0.000000e+00> : vector<32x32xf32>
    %43 = tpu.matmul %0, %42, %cst_31 {dimension_numbers = #tpu.dot_dimension_numbers<[1], [0], [0], [1], [0, 0, 1, 1], [], []>} : vector<32x32xf32>, vector<32x32xf32>, vector<32x32xf32> -> vector<32x32xf32>
    %c1_32 = arith.constant 1 : index
    %c0_33 = arith.constant 0 : index
    %c0_34 = arith.constant 0 : index
    %44 = vector.load %arg3[%c1_32, %c0_33, %c0_34] : memref<2x32x32xf32, #tpu.memory_space<vmem>>, vector<1x32x32xf32>
    %45 = vector.shape_cast %44 : vector<1x32x32xf32> to vector<32x32xf32>
    %cst_35 = arith.constant dense<0.000000e+00> : vector<32x32xf32>
    %46 = tpu.matmul %0, %45, %cst_35 {dimension_numbers = #tpu.dot_dimension_numbers<[1], [0], [0], [1], [0, 0, 1, 1], [], []>} : vector<32x32xf32>, vector<32x32xf32>, vector<32x32xf32> -> vector<32x32xf32>
    %47 = vector.shape_cast %40 : vector<32x32xf32> to vector<2x16x32xf32>
    %48 = vector.shape_cast %43 : vector<32x32xf32> to vector<2x16x32xf32>
    %49 = vector.shape_cast %46 : vector<32x32xf32> to vector<2x16x32xf32>
    "tpu.trace_start"() <{level = 10 : i32, message = "bnd,bmd->bnm"}> : () -> ()
    %cst_36 = arith.constant dense<0.000000e+00> : vector<2x16x16xf32>
    %50 = tpu.matmul %47, %48, %cst_36 {dimension_numbers = #tpu.dot_dimension_numbers<[2], [2], [1], [1], [0, 0, 0, 1, 1, 1], [0], [0]>} : vector<2x16x32xf32>, vector<2x16x32xf32>, vector<2x16x16xf32> -> vector<2x16x16xf32>
    "tpu.trace_stop"() : () -> ()
    %cst_37 = arith.constant 0.176776692 : f32
    %51 = vector.broadcast %cst_37 : f32 to vector<2x16x16xf32>
    %52 = arith.mulf %50, %51 : vector<2x16x16xf32>
    %c1_38 = arith.constant 1 : index
    %c0_39 = arith.constant 0 : index
    %c0_40 = arith.constant 0 : index
    %53 = vector.load %arg4[%c1_38, %c0_39, %c0_40] : memref<2x16x16xf32, #tpu.memory_space<vmem>>, vector<1x16x16xf32>
    %54 = vector.shape_cast %53 : vector<1x16x16xf32> to vector<16x16xf32>
    %55 = vector.shape_cast %54 : vector<16x16xf32> to vector<1x16x16xf32>
    %56 = vector.broadcast %55 : vector<1x16x16xf32> to vector<2x16x16xf32>
    %57 = arith.addf %52, %56 : vector<2x16x16xf32>
    %cst_41 = arith.constant dense<0xFF800000> : vector<2x16xf32>
    %58 = vector.multi_reduction <maximumf>, %57, %cst_41 [2] : vector<2x16x16xf32> to vector<2x16xf32>
    %59 = vector.shape_cast %58 : vector<2x16xf32> to vector<2x16x1xf32>
    %60 = vector.broadcast %59 : vector<2x16x1xf32> to vector<2x16x16xf32>
    %61 = arith.subf %57, %60 : vector<2x16x16xf32>
    %62 = math.exp %61 : vector<2x16x16xf32>
    %cst_42 = arith.constant dense<0.000000e+00> : vector<2x16xf32>
    %63 = vector.multi_reduction <add>, %62, %cst_42 [2] : vector<2x16x16xf32> to vector<2x16xf32>
    %64 = vector.shape_cast %63 : vector<2x16xf32> to vector<2x16x1xf32>
    %65 = tpu.reciprocal %64 {approx = true} : vector<2x16x1xf32> -> vector<2x16x1xf32>
    %66 = vector.broadcast %65 : vector<2x16x1xf32> to vector<2x16x16xf32>
    %67 = arith.mulf %62, %66 : vector<2x16x16xf32>
    "tpu.trace_start"() <{level = 10 : i32, message = "bnm,bmd->bnd"}> : () -> ()
    %cst_43 = arith.constant dense<0.000000e+00> : vector<2x16x32xf32>
    %68 = tpu.matmul %67, %49, %cst_43 {dimension_numbers = #tpu.dot_dimension_numbers<[2], [1], [1], [2], [0, 0, 0, 1, 1, 2], [0], [0]>} : vector<2x16x16xf32>, vector<2x16x32xf32>, vector<2x16x32xf32> -> vector<2x16x32xf32>
    "tpu.trace_stop"() : () -> ()
    %69 = vector.shape_cast %68 : vector<2x16x32xf32> to vector<32x32xf32>
    %c1_44 = arith.constant 1 : index
    %c0_45 = arith.constant 0 : index
    %c0_46 = arith.constant 0 : index
    %70 = vector.load %arg5[%c1_44, %c0_45, %c0_46] : memref<2x32x32xf32, #tpu.memory_space<vmem>>, vector<1x32x32xf32>
    %71 = vector.shape_cast %70 : vector<1x32x32xf32> to vector<32x32xf32>
    %cst_47 = arith.constant dense<0.000000e+00> : vector<32x32xf32>
    %72 = tpu.matmul %69, %71, %cst_47 {dimension_numbers = #tpu.dot_dimension_numbers<[1], [0], [0], [1], [0, 0, 1, 1], [], []>} : vector<32x32xf32>, vector<32x32xf32>, vector<32x32xf32> -> vector<32x32xf32>
    %73 = arith.addf %37, %72 : vector<32x32xf32>
    %c0_48 = arith.constant 0 : index
    %c0_49 = arith.constant 0 : index
    %74 = vector.load %arg6[%c0_48, %c0_49] : memref<1x32xf32, #tpu.memory_space<vmem>>, vector<1x32xf32>
    %75 = vector.broadcast %74 : vector<1x32xf32> to vector<32x32xf32>
    %76 = arith.addf %73, %75 : vector<32x32xf32>
    %c0_50 = arith.constant 0 : index
    %c0_51 = arith.constant 0 : index
    %77 = vector.load %arg7[%c0_50, %c0_51] : memref<32x32xf32, #tpu.memory_space<vmem>>, vector<32x32xf32>
    tpu.vector_store %arg7[%c0_50, %c0_51], %76 {strides = array<i32>} : memref<32x32xf32, #tpu.memory_space<vmem>>, vector<32x32xf32>,
    return
  }
}

</mosaic_0001>

<bundles_post_ra>
// kernel: attention_pallas.1
= control target key start
LH: loop header
LB: loop body
LE: loop exit
PB: predicated region body
PF: predicated region fallthrough
CT: control target
= control target key end

     0   :  { %vm35_vm0 = vcmask 261120   ;;  %s2423_s0 = inlined_call_operand.vmem [shape: f32[32,32], index: 0, kind: input, shape index: {}]   ;;  %s2424_s1 = inlined_call_operand.vmem [shape: f32[2,32,32], index: 1, kind: input, shape index: {}]   ;;  %s2425_s2 = inlined_call_operand.vmem [shape: f32[2,32,32], index: 2, kind: input, shape index: {}]   ;;  %s2426_s3 = inlined_call_operand.vmem [shape: f32[2,32,32], index: 3, kind: input, shape index: {}]   ;;  %s2427_s4 = inlined_call_operand.vmem [shape: f32[2,16,16], index: 4, kind: input, shape index: {}]   ;;  %s2428_s5 = inlined_call_operand.vmem [shape: f32[2,32,32], index: 5, kind: input, shape index: {}]   ;;  %s2429_s6 = inlined_call_operand.vmem [shape: f32[1,32], index: 6, kind: input, shape index: {}]   ;;  %s2430_s7 = inlined_call_operand.hbm [shape: f32[32,32], index: 7, kind: output, shape index: {}]  }
   0x1   :  { %v31_v0 = vld [vmem:[%s2424_s1] sm:$0xff]  ;;  %v32_v1 = vld [vmem:[%s2424_s1 + $0x8] sm:$0xff]  ;;  %v33_v2 = vld [vmem:[%s2424_s1 + $0x10] sm:$0xff] }
   0x2   :  { %v1936_v3 = vpack.c.bf16 %v32_v1, %v31_v0  ;;  %v34_v4 = vld [vmem:[%s2424_s1 + $0x18] sm:$0xff]  ;;  %v2161_v5 = vld [vmem:[%s2423_s0] sm:$0xff]  ;;  %v134_v8 = vld [vmem:[%s2425_s2 + $0x8] sm:$0xff] }
   0x3   :  { %v1940_v6 = vpack.c.bf16 %v34_v4, %v33_v2  ;;  %1776 = vmatprep.mubr.msk.f32.mxu1 %vm35_vm0, %v2161_v5  ;;  %v133_v7 = vld [vmem:[%s2425_s2] sm:$0xff]  ;;  %1804 = vmatprep.mubr.msk.f32.mxu0 %vm35_vm0, %v2161_v5  ;;  %v223_v10 = vld [vmem:[%s2426_s3 + $0x8] sm:$0xff]  ;;  %v224_v11 = vld [vmem:[%s2426_s3 + $0x10] sm:$0xff] }
   0x4   :  { %1937 = vmatprep.subr.bf16.mxu1 %v1936_v3  ;;  %v222_v9 = vld [vmem:[%s2426_s3] sm:$0xff]  ;;  %v1944_v12 = vpack.c.bf16 %v134_v8, %v133_v7  ;;  %v225_v14 = vld [vmem:[%s2426_s3 + $0x18] sm:$0xff] }
   0x5   :  { %1939 = vmatpush3.bf16.msra.mxu1 %v1936_v3  ;;  %v1952_v13 = vpack.c.bf16 %v223_v10, %v222_v9 }
   0x6   :  { %1941 = vmatprep.subr.bf16.mxu1 %v1940_v6 }
   0x7   :  { %12 = vsyncpa [#allocation3], 0  ;;  %v135_v15 = vld [vmem:[%s2425_s2 + $0x10] sm:$0xff]  ;;  %v136_v16 = vld [vmem:[%s2425_s2 + $0x18] sm:$0xff]  ;;  %v1956_v17 = vpack.c.bf16 %v225_v14, %v224_v11  ;;  %1953 = vmatprep.subr.bf16.mxu0 %v1952_v13  ;;  %vm495_vm2 = vcmask 130048   ;;  %s2103_s28 = smov [#allocation2]  }
   0x8   :  { %v2194_v18 = vld [vmem:[%s2423_s0 + $0x8] sm:$0xff]  ;;  %1955 = vmatpush3.bf16.msra.mxu0 %v1952_v13  ;;  %v2199_v19 = vld [vmem:[%s2423_s0 + $0x10] sm:$0xff]  ;;  %v1948_v20 = vpack.c.bf16 %v136_v16, %v135_v15  ;;  %v2208_v21 = vld [vmem:[%s2423_s0 + $0x18] sm:$0xff]  ;;  %s1586_s29 = sshll.u32 %s2103_s28, 4  ;;  %s1587_s29 = int_to_ptr.vmem [resolvable:$true] %s1586_s29 }
   0x9   :  { %1943 = vmatpush3.bf16.msra.mxu1 %v1940_v6  ;;  %1957 = vmatprep.subr.bf16.mxu0 %v1956_v17  ;;  %vm2230_vm1 = vmpackc.low %vm35_vm0, %vm35_vm0  ;;  %v489_v41 = vld [vmem:[%s2427_s4] sm:$0xff]  ;;  %v490_v44 = vld [vmem:[%s2427_s4 + $0x8] sm:$0xff]  ;;  %p2084_p1 = scmp.lt.s32.totalorder %s1587_s29, %s1587_s29 }
   0xa   :  { %1945 = vmatprep.subr.bf16.mxu1 %v1944_v12  ;;  %v1621_v14 = vld [vmem:[%s2424_s1 + $0x20] sm:$0xff]  ;;  %v1622_v15 = vld [vmem:[%s2424_s1 + $0x28] sm:$0xff]  ;;  %v1654_v31 = vld [vmem:[%s2427_s4 + $0x18] sm:$0xff] }
   0xb   :  { %v1980_v16 = vpack.c.bf16 %v1622_v15, %v1621_v14 }
   0xc   :  { %1777 = vmatmul.mubr.msk.f32.vlgmr.msra.gmra.mrb[0].mxu1 %vm35_vm0, %v2194_v18  ;;  %1959 = vmatpush3.bf16.msra.mxu0 %v1956_v17  ;;  %v1623_v17 = vld [vmem:[%s2424_s1 + $0x30] sm:$0xff] }
   0xd   :  { %1947 = vmatpush3.bf16.msra.mxu1 %v1944_v12  ;;  %1779 = vmatprep.mubr.msk.f32.mxu1 %vm35_vm0, %v2199_v19 }
   0xe   :  { %1949 = vmatprep.subr.bf16.mxu1 %v1948_v20 }
   0xf   :  { %1805 = vmatmul.mubr.msk.f32.vlgmr.msra.gmra.mrb[0].mxu0 %vm35_vm0, %v2194_v18 }
  0x10   :  { %1780 = vmatmul.mubr.msk.f32.gmra.mrb[2].mxu1 %vm35_vm0, %v2208_v21  ;;  %1807 = vmatprep.mubr.msk.f32.mxu0 %vm35_vm0, %v2199_v19 }
  0x11   :  { %1951 = vmatpush3.bf16.msra.mxu1 %v1948_v20  ;;  %1790 = vmatprep.mubr.msk.f32.mxu1 %vm35_vm0, %v2161_v5  ;;  %v1624_v20 = vld [vmem:[%s2424_s1 + $0x38] sm:$0xff] }
  0x13   :  { %1808 = vmatmul.mubr.msk.f32.gmra.mrb[2].mxu0 %vm35_vm0, %v2208_v21 }
  0x14   :  { %1791 = vmatmul.mubr.msk.f32.vlgmr.msra.gmra.mrb[4].mxu1 %vm35_vm0, %v2194_v18 }
  0x15   :  { %1793 = vmatprep.mubr.msk.f32.mxu1 %vm35_vm0, %v2199_v19 }
  0x18   :  { %1794 = vmatmul.mubr.msk.f32.gmra.mrb[6].mxu1 %vm35_vm0, %v2208_v21 }
  0xdf   :  { %v1778_v22 = vpop.f32.mrb[0].mxu1 }
  0xe0   :  { %v114_v23 = vpop.f32.mrb[1].mxu1 }
  0xe1   :  { %1814 = vmatprep.mubr.msk.f32.mxu1 %vm35_vm0, %v114_v23 }
  0xe2   :  { %v1806_v26 = vpop.f32.mrb[0].mxu0 }
  0xe3   :  { %v1781_v24 = vpop.f32.mrb[2].mxu1  ;;  %v292_v27 = vpop.f32.mrb[1].mxu0 }
  0xe4   :  { %v124_v25 = vpop.f32.mrb[3].mxu1  ;;  %v1972_v29 = vpack.c.bf16 %v1806_v26, %v292_v27 }
  0xe5   :  { %1821 = vmatprep.mubr.msk.f32.mxu0 %vm35_vm0, %v124_v25 }
  0xe6   :  { %v1809_v33 = vpop.f32.mrb[2].mxu0 }
  0xe7   :  { %v1792_v28 = vpop.f32.mrb[4].mxu1  ;;  %v302_v34 = vpop.f32.mrb[3].mxu0 }
  0xe8   :  { %v203_v30 = vpop.f32.mrb[5].mxu1  ;;  %v2236_v36 = vpack.c.bf16 %v1809_v33, %v302_v34 }
  0xe9   :  { %v1960_v32 = vpack.c.bf16 %v1792_v28, %v203_v30  ;;  %v1630_v30 = vld [vmem:[%s2425_s2 + $0x28] sm:$0xff] }
  0xeb   :  { %v1795_v35 = vpop.f32.mrb[6].mxu1  ;;  %1962 = vmatprep.subr.msk.bf16.mxu1 %vm2230_vm1, %v1960_v32 }
  0xec   :  { %v213_v37 = vpop.f32.mrb[7].mxu1  ;;  %1965 = vmatpush3.bf16.xpose.msk.msra.mxu1 %vm2230_vm1, %v1960_v32 }
  0xed   :  { %v1966_v38 = vpack.c.bf16 %v1795_v35, %v213_v37  ;;  %1973 = vmatprep.subr.bf16.mxu1 %v1972_v29 }
  0xef   :  { %1968 = vmatprep.subr.msk.bf16.mxu0 %vm2230_vm1, %v1966_v38 }
  0xf0   :  { %1971 = vmatpush3.bf16.xpose.msk.msra.mxu0 %vm2230_vm1, %v1966_v38  ;;  %v1631_v38 = vld [vmem:[%s2425_s2 + $0x30] sm:$0xff] }
  0xf1   :  { %1981 = vmatprep.subr.bf16.mxu0 %v1980_v16 }
  0xf3   :  { %1815 = vmatmul.mubr.msk.f32.vlgmr.msra.gmra.mrb[8].mxu1 %vm35_vm0, %v1778_v22  ;;  %v1984_v22 = vpack.c.bf16 %v1624_v20, %v1623_v17 }
  0xf4   :  { %1975 = vmatpush3.bf16.msra.mxu1 %v1972_v29  ;;  %v1629_v29 = vld [vmem:[%s2425_s2 + $0x20] sm:$0xff] }
  0xf5   :  { %1977 = vmatprep.subr.bf16.mxu1 %v2236_v36  ;;  %v1988_v37 = vpack.c.bf16 %v1630_v30, %v1629_v29 }
  0xf7   :  { %1822 = vmatmul.mubr.msk.f32.vlgmr.msra.gmra.mrb[4].mxu0 %vm35_vm0, %v1781_v24 }
  0xf8   :  { %1846 = vmatprep.mubr.msk.f32.mxu0 %vm35_vm0, %v2161_v5  ;;  %1983 = vmatpush3.bf16.msra.mxu0 %v1980_v16 }
  0xf9   :  { %1985 = vmatprep.subr.bf16.mxu0 %v1984_v22 }
  0xfc   :  { %1987 = vmatpush3.bf16.msra.mxu0 %v1984_v22 }
  0xff   :  { %1847 = vmatmul.mubr.msk.f32.vlgmr.msra.gmra.mrb[6].mxu0 %vm35_vm0, %v2194_v18 }
 0x100   :  { %1849 = vmatprep.mubr.msk.f32.mxu0 %vm35_vm0, %v2199_v19 }
 0x103   :  { %1850 = vmatmul.mubr.msk.f32.gmra.mrb[8].mxu0 %vm35_vm0, %v2208_v21 }
 0x104   :  { %1874 = vmatprep.mubr.msk.f32.mxu0 %vm35_vm0, %v2161_v5 }
 0x1c6   :  { %v1816_v39 = vpop.f32.mrb[8].mxu1 }
 0x1c7   :  { %v389_v40 = vpop.f32.mrb[9].mxu1  ;;  %v486_v42 = vmul.f32 0.17677669, %v1816_v39  ;;  %v1632_v39 = vld [vmem:[%s2425_s2 + $0x38] sm:$0xff] }
 0x1c8   :  { %v485_v43 = vmul.f32 0.17677669, %v389_v40 }
 0x1c9   :  { %v492_v51 = vadd.f32 %v490_v44, %v486_v42  ;;  %v1992_v42 = vpack.c.bf16 %v1632_v39, %v1631_v38 }
 0x1ca   :  { %v1823_v45 = vpop.f32.mrb[4].mxu0  ;;  %v491_v46 = vadd.f32 %v489_v41, %v485_v43  ;;  %v1638_v43 = vld [vmem:[%s2426_s3 + $0x28] sm:$0xff] }
 0x1cb   :  { %v476_v47 = vpop.f32.mrb[5].mxu0  ;;  %v488_v48 = vmul.f32 0.17677669, %v1823_v45  ;;  %v499_v54 = vsel %vm495_vm2, %v492_v51, -inf  ;;  %v1640_v45 = vld [vmem:[%s2426_s3 + $0x38] sm:$0xff] }
 0x1cc   :  { %v487_v49 = vmul.f32 0.17677669, %v476_v47  ;;  %v496_v50 = vsel %vm495_vm2, %v491_v46, -inf }
 0x1cd   :  { %497 = vmax.xlane.f32.xlu0 %v496_v50  ;;  %v494_v55 = vadd.f32 %v490_v44, %v488_v48  ;;  %v1639_v44 = vld [vmem:[%s2426_s3 + $0x30] sm:$0xff] }
 0x1ce   :  { %v493_v52 = vadd.f32 %v489_v41, %v487_v49 }
 0x1cf   :  { %v505_v56 = vsel %vm495_vm2, %v494_v55, -inf }
 0x1d0   :  { %v502_v53 = vsel %vm495_vm2, %v493_v52, -inf }
 0x1d1   :  { %503 = vmax.xlane.f32.xlu1 %v502_v53  ;;  %500 = vmax.xlane.f32.xlu0 %v499_v54 }
 0x1d2   :  { %v1848_v47 = vpop.f32.mrb[6].mxu0 }
 0x1d3   :  { %v777_v48 = vpop.f32.mrb[7].mxu0 }
 0x1d5   :  { %506 = vmax.xlane.f32.xlu1 %v505_v56 }
 0x1d6   :  { %v1851_v49 = vpop.f32.mrb[8].mxu0 }
 0x1d7   :  { %v787_v50 = vpop.f32.mrb[9].mxu0 }
 0x25a   :  { %v498_v57 = vpop.xlane.xlu0 %497 }
 0x25b   :  { %v508_v58 = vsub.f32 %v491_v46, %v498_v57  ;;  %v2000_v46 = vpack.c.bf16 %v1640_v45, %v1639_v44  ;;  %v1662_v45 = vld [vmem:[%s2428_s5 + $0x38] sm:$0xff] }
 0x25d   :  { %v512_v59 = vmul.f32 1.442695, %v508_v58 }
 0x25e   :  { %v504_v60 = vpop.xlane.xlu1 %503  ;;  %v501_v61 = vpop.xlane.xlu0 %500 }
 0x25f   :  { %2047 = vpow2.f32 %v512_v59  ;;  %v510_v62 = vsub.f32 %v493_v52, %v504_v60  ;;  %v509_v63 = vsub.f32 %v492_v51, %v501_v61 }
 0x261   :  { %v516_v0 = vmul.f32 1.442695, %v510_v62  ;;  %v514_v1 = vmul.f32 1.442695, %v509_v63 }
 0x262   :  { %v507_v2 = vpop.xlane.xlu1 %506 }
 0x263   :  { %2049 = vpow2.f32 %v516_v0  ;;  %v511_v3 = vsub.f32 %v494_v55, %v507_v2 }
 0x264   :  { %2051 = vpow2.f32 %v514_v1 }
 0x265   :  { %v518_v4 = vmul.f32 1.442695, %v511_v3  ;;  %v1653_v3 = vld [vmem:[%s2427_s4 + $0x10] sm:$0xff] }
 0x267   :  { %2053 = vpow2.f32 %v518_v4 }
 0x269   :  { %v2048_v6 = vpop.eup %2047 }
 0x26a   :  { %v520_v7 = vsel %vm495_vm2, %v2048_v6, 0.0 }
 0x26b   :  { %521 = vadd.xlane.f32.xlu0 %v520_v7 }
 0x26d   :  { %v2050_v8 = vpop.eup %2049 }
 0x26e   :  { %v2052_v9 = vpop.eup %2051  ;;  %v526_v10 = vsel %vm495_vm2, %v2050_v8, 0.0 }
 0x26f   :  { %527 = vadd.xlane.f32.xlu0 %v526_v10  ;;  %v523_v11 = vsel %vm495_vm2, %v2052_v9, 0.0 }
 0x270   :  { %524 = vadd.xlane.f32.xlu1 %v523_v11 }
 0x271   :  { %v2054_v12 = vpop.eup %2053 }
 0x272   :  { %v529_v13 = vsel %vm495_vm2, %v2054_v12, 0.0 }
 0x274   :  { %530 = vadd.xlane.f32.xlu1 %v529_v13 }
 0x2f8   :  { %v522_v23 = vpop.xlane.xlu0 %521 }
 0x2f9   :  { %2055 = vrcp.f32 %v522_v23 }
 0x2fc   :  { %v528_v24 = vpop.xlane.xlu0 %527 }
 0x2fd   :  { %v525_v25 = vpop.xlane.xlu1 %524  ;;  %2057 = vrcp.f32 %v528_v24 }
 0x2fe   :  { %2059 = vrcp.f32 %v525_v25 }
 0x301   :  { %v531_v26 = vpop.xlane.xlu1 %530 }
 0x302   :  { %2061 = vrcp.f32 %v531_v26 }
 0x303   :  { %v2056_v27 = vpop.eup %2055 }
 0x304   :  { %v536_v28 = vmul.f32 %v2056_v27, %v2048_v6 }
 0x306   :  { %1828 = vmatprep.mubr.msk.f32.mxu1 %vm495_vm2, %v536_v28 }
 0x307   :  { %v2058_v32 = vpop.eup %2057 }
 0x308   :  { %v2060_v33 = vpop.eup %2059  ;;  %v538_v34 = vmul.f32 %v2058_v32, %v2050_v8 }
 0x309   :  { %v537_v35 = vmul.f32 %v2060_v33, %v2052_v9 }
 0x30b   :  { %1829 = vmatmul.mubr.msk.f32.vlgmr.msra.gmra.mrb[10].mxu1 %vm495_vm2, %v537_v35 }
 0x30c   :  { %v2062_v40 = vpop.eup %2061  ;;  %1979 = vmatpush3.bf16.msra.mxu1 %v2236_v36  ;;  %1835 = vmatprep.mubr.msk.f32.mxu1 %vm495_vm2, %v538_v34  ;;  %v1637_v36 = vld [vmem:[%s2426_s3 + $0x20] sm:$0xff] }
 0x30d   :  { %v539_v41 = vmul.f32 %v2062_v40, %v2054_v12  ;;  %1989 = vmatprep.subr.bf16.mxu1 %v1988_v37 }
 0x30f   :  { %1836 = vmatmul.mubr.msk.f32.vlgmr.msra.gmra.mrb[12].mxu1 %vm495_vm2, %v539_v41 }
 0x310   :  { %1991 = vmatpush3.bf16.msra.mxu1 %v1988_v37  ;;  %1860 = vmatprep.mubr.msk.f32.mxu1 %vm35_vm0, %v2161_v5  ;;  %v1996_v5 = vpack.c.bf16 %v1638_v43, %v1637_v36  ;;  %v1659_v36 = vld [vmem:[%s2428_s5 + $0x20] sm:$0xff]  ;;  %v1660_v43 = vld [vmem:[%s2428_s5 + $0x28] sm:$0xff] }
 0x311   :  { %1993 = vmatprep.subr.bf16.mxu1 %v1992_v42  ;;  %v2024_v44 = vpack.c.bf16 %v1660_v43, %v1659_v36 }
 0x312   :  { %1997 = vmatprep.subr.bf16.mxu0 %v1996_v5 }
 0x313   :  { %1999 = vmatpush3.bf16.msra.mxu0 %v1996_v5  ;;  %v1661_v5 = vld [vmem:[%s2428_s5 + $0x30] sm:$0xff] }
 0x314   :  { %1995 = vmatpush3.bf16.msra.mxu1 %v1992_v42  ;;  %2001 = vmatprep.subr.bf16.mxu0 %v2000_v46 }
 0x317   :  { %1861 = vmatmul.mubr.msk.f32.vlgmr.msra.gmra.mrb[14].mxu1 %vm35_vm0, %v2194_v18  ;;  %2003 = vmatpush3.bf16.msra.mxu0 %v2000_v46  ;;  %v2028_v46 = vpack.c.bf16 %v1662_v45, %v1661_v5 }
 0x318   :  { %1863 = vmatprep.mubr.msk.f32.mxu1 %vm35_vm0, %v2199_v19 }
 0x31a   :  { %1875 = vmatmul.mubr.msk.f32.vlgmr.msra.gmra.mrb[10].mxu0 %vm35_vm0, %v2194_v18 }
 0x31b   :  { %1864 = vmatmul.mubr.msk.f32.gmra.mrb[16].mxu1 %vm35_vm0, %v2208_v21  ;;  %1877 = vmatprep.mubr.msk.f32.mxu0 %vm35_vm0, %v2199_v19 }
 0x31c   :  { %1884 = vmatprep.mubr.msk.f32.mxu1 %vm35_vm0, %v777_v48 }
 0x31e   :  { %1878 = vmatmul.mubr.msk.f32.gmra.mrb[12].mxu0 %vm35_vm0, %v2208_v21 }
 0x31f   :  { %1891 = vmatprep.mubr.msk.f32.mxu0 %vm35_vm0, %v787_v50 }
 0x3de   :  { %v2328_v51 = vpop.f32.mrb[10].mxu1 }
 0x3df   :  { %v2330_v52 = vpop.f32.mrb[11].mxu1 }
 0x3e2   :  { %v2332_v53 = vpop.f32.mrb[12].mxu1 }
 0x3e3   :  { %v2334_v18 = vpop.f32.mrb[13].mxu1 }
 0x3ea   :  { %v1862_v19 = vpop.f32.mrb[14].mxu1 }
 0x3eb   :  { %v867_v54 = vpop.f32.mrb[15].mxu1 }
 0x3ec   :  { %v2004_v55 = vpack.c.bf16 %v1862_v19, %v867_v54 }
 0x3ed   :  { %v1876_v58 = vpop.f32.mrb[10].mxu0 }
 0x3ee   :  { %v1865_v21 = vpop.f32.mrb[16].mxu1  ;;  %2006 = vmatprep.subr.msk.bf16.mxu1 %vm2230_vm1, %v2004_v55  ;;  %v957_v59 = vpop.f32.mrb[11].mxu0 }
 0x3ef   :  { %v877_v56 = vpop.f32.mrb[17].mxu1  ;;  %2009 = vmatpush3.bf16.xpose.msk.msra.mxu1 %vm2230_vm1, %v2004_v55  ;;  %v2016_v60 = vpack.c.bf16 %v1876_v58, %v957_v59 }
 0x3f0   :  { %v2010_v57 = vpack.c.bf16 %v1865_v21, %v877_v56 }
 0x3f1   :  { %2017 = vmatprep.subr.bf16.mxu1 %v2016_v60  ;;  %v1879_v61 = vpop.f32.mrb[12].mxu0 }
 0x3f2   :  { %2012 = vmatprep.subr.msk.bf16.mxu0 %vm2230_vm1, %v2010_v57  ;;  %v967_v62 = vpop.f32.mrb[13].mxu0 }
 0x3f3   :  { %2015 = vmatpush3.bf16.xpose.msk.msra.mxu0 %vm2230_vm1, %v2010_v57  ;;  %v2346_v63 = vpack.c.bf16 %v1879_v61, %v967_v62  ;;  %v703_v61 = vld [vmem:[%s2428_s5 + $0x8] sm:$0xff] }
 0x3f4   :  { %2025 = vmatprep.subr.bf16.mxu0 %v2024_v44 }
 0x3f6   :  { %1885 = vmatmul.mubr.msk.f32.vlgmr.msra.gmra.mrb[18].mxu1 %vm35_vm0, %v1848_v47 }
 0x3f7   :  { %2019 = vmatpush3.bf16.msra.mxu1 %v2016_v60  ;;  %v702_v60 = vld [vmem:[%s2428_s5] sm:$0xff] }
 0x3f8   :  { %2021 = vmatprep.subr.bf16.mxu1 %v2346_v63  ;;  %v2032_v62 = vpack.c.bf16 %v703_v61, %v702_v60 }
 0x3fa   :  { %1892 = vmatmul.mubr.msk.f32.vlgmr.msra.gmra.mrb[14].mxu0 %vm35_vm0, %v1851_v49 }
 0x3fb   :  { %2027 = vmatpush3.bf16.msra.mxu0 %v2024_v44 }
 0x3fc   :  { %2029 = vmatprep.subr.bf16.mxu0 %v2028_v46 }
 0x3ff   :  { %2031 = vmatpush3.bf16.msra.mxu0 %v2028_v46 }
 0x400   :  { %2033 = vmatprep.subr.bf16.mxu0 %v2032_v62 }
 0x4c9   :  { %v1886_v0 = vpop.f32.mrb[18].mxu1 }
 0x4ca   :  { %v1151_v1 = vmul.f32 0.17677669, %v1886_v0  ;;  %v1054_v2 = vpop.f32.mrb[19].mxu1  ;;  %v705_v0 = vld [vmem:[%s2428_s5 + $0x18] sm:$0xff] }
 0x4cb   :  { %v1150_v4 = vmul.f32 0.17677669, %v1054_v2 }
 0x4cc   :  { %v1158_v6 = vadd.f32 %v1654_v31, %v1151_v1 }
 0x4cd   :  { %v1893_v7 = vpop.f32.mrb[14].mxu0  ;;  %v1157_v8 = vadd.f32 %v1653_v3, %v1150_v4 }
 0x4ce   :  { %v1153_v9 = vmul.f32 0.17677669, %v1893_v7  ;;  %v1141_v10 = vpop.f32.mrb[15].mxu0  ;;  %v1164_v11 = vsel %vm495_vm2, %v1158_v6, -inf }
 0x4cf   :  { %v1152_v12 = vmul.f32 0.17677669, %v1141_v10  ;;  %1165 = vmax.xlane.f32.xlu1 %v1164_v11  ;;  %v1161_v13 = vsel %vm495_vm2, %v1157_v8, -inf }
 0x4d0   :  { %1162 = vmax.xlane.f32.xlu0 %v1161_v13  ;;  %v1160_v14 = vadd.f32 %v1654_v31, %v1153_v9 }
 0x4d1   :  { %v1159_v15 = vadd.f32 %v1653_v3, %v1152_v12 }
 0x4d2   :  { %v1170_v16 = vsel %vm495_vm2, %v1160_v14, -inf }
 0x4d3   :  { %1171 = vmax.xlane.f32.xlu1 %v1170_v16  ;;  %v1167_v17 = vsel %vm495_vm2, %v1159_v15, -inf }
 0x4d4   :  { %1168 = vmax.xlane.f32.xlu0 %v1167_v17 }
 0x55c   :  { %v1166_v20 = vpop.xlane.xlu1 %1165 }
 0x55d   :  { %v1174_v22 = vsub.f32 %v1158_v6, %v1166_v20  ;;  %v1163_v23 = vpop.xlane.xlu0 %1162  ;;  %v1671_v6 = vld [vmem:[%s2429_s6] ss:$0 sm:$0xff]  ;;  %s2079_s6 = scalar_lea.vmem %s1587_s29, 512 }
 0x55e   :  { %v1173_v24 = vsub.f32 %v1157_v8, %v1163_v23  ;;  %p2080_p0 = scmp.ne.s32.totalorder %s1587_s29, %s2079_s6  ;;  %p2085_p2 = scmp.lt.s32.totalorder %s2079_s6, %s2079_s6 }
 0x55f   :  { %v1179_v25 = vmul.f32 1.442695, %v1174_v22 }
 0x560   :  { %v1177_v26 = vmul.f32 1.442695, %v1173_v24  ;;  %v1172_v27 = vpop.xlane.xlu1 %1171  ;;  %p2086_p3 = por %p2085_p2, %p2084_p1 }
 0x561   :  { %2063 = vpow2.f32 %v1179_v25  ;;  %v1176_v28 = vsub.f32 %v1160_v14, %v1172_v27  ;;  %v1169_v29 = vpop.xlane.xlu0 %1168 }
 0x562   :  { %2065 = vpow2.f32 %v1177_v26  ;;  %v1175_v30 = vsub.f32 %v1159_v15, %v1169_v29  ;;  %p2087_p4 = pnand %p2086_p3, %p2080_p0 }
 0x563   :  { %v1183_v32 = vmul.f32 1.442695, %v1176_v28 }
 0x564   :  { %v1181_v33 = vmul.f32 1.442695, %v1175_v30 }
 0x565   :  { %2067 = vpow2.f32 %v1183_v32 }
 0x566   :  { %2069 = vpow2.f32 %v1181_v33 }
 0x56b   :  { %v2064_v34 = vpop.eup %2063 }
 0x56c   :  { %v2066_v35 = vpop.eup %2065  ;;  %v1188_v37 = vsel %vm495_vm2, %v2064_v34, 0.0 }
 0x56d   :  { %1189 = vadd.xlane.f32.xlu1 %v1188_v37  ;;  %v1185_v38 = vsel %vm495_vm2, %v2066_v35, 0.0 }
 0x56e   :  { %1186 = vadd.xlane.f32.xlu0 %v1185_v38 }
 0x56f   :  { %v2068_v39 = vpop.eup %2067 }
 0x570   :  { %v2070_v40 = vpop.eup %2069  ;;  %v1194_v41 = vsel %vm495_vm2, %v2068_v39, 0.0 }
 0x571   :  { %1195 = vadd.xlane.f32.xlu1 %v1194_v41  ;;  %v1191_v42 = vsel %vm495_vm2, %v2070_v40, 0.0 }
 0x572   :  { %1192 = vadd.xlane.f32.xlu0 %v1191_v42 }
 0x5fa   :  { %v1190_v47 = vpop.xlane.xlu1 %1189 }
 0x5fb   :  { %2071 = vrcp.f32 %v1190_v47  ;;  %v1187_v48 = vpop.xlane.xlu0 %1186 }
 0x5fc   :  { %2073 = vrcp.f32 %v1187_v48 }
 0x5fe   :  { %v1196_v49 = vpop.xlane.xlu1 %1195 }
 0x5ff   :  { %2075 = vrcp.f32 %v1196_v49  ;;  %v1193_v50 = vpop.xlane.xlu0 %1192 }
 0x600   :  { %2077 = vrcp.f32 %v1193_v50 }
 0x605   :  { %v2072_v19 = vpop.eup %2071 }
 0x606   :  { %v2074_v54 = vpop.eup %2073  ;;  %v1202_v21 = vmul.f32 %v2072_v19, %v2064_v34 }
 0x607   :  { %v1201_v55 = vmul.f32 %v2074_v54, %v2066_v35 }
 0x609   :  { %v2076_v56 = vpop.eup %2075  ;;  %1898 = vmatprep.mubr.msk.f32.mxu1 %vm495_vm2, %v1201_v55 }
 0x60a   :  { %v2078_v57 = vpop.eup %2077  ;;  %1899 = vmatmul.mubr.msk.f32.vlgmr.msra.gmra.mrb[20].mxu1 %vm495_vm2, %v1202_v21  ;;  %v1204_v59 = vmul.f32 %v2076_v56, %v2068_v39 }
 0x60b   :  { %2023 = vmatpush3.bf16.msra.mxu1 %v2346_v63  ;;  %v1203_v58 = vmul.f32 %v2078_v57, %v2070_v40  ;;  %v704_v63 = vld [vmem:[%s2428_s5 + $0x10] sm:$0xff] }
 0x60c   :  { %v2036_v2 = vpack.c.bf16 %v705_v0, %v704_v63 }
 0x60d   :  { %1905 = vmatprep.mubr.msk.f32.mxu1 %vm495_vm2, %v1203_v58 }
 0x60e   :  { %1906 = vmatmul.mubr.msk.f32.vlgmr.msra.gmra.mrb[22].mxu1 %vm495_vm2, %v1204_v59 }
 0x6dd   :  { %v1900_v31 = vpop.f32.mrb[20].mxu1 }
 0x6de   :  { %v1277_v1 = vpop.f32.mrb[21].mxu1 }
 0x6df   :  { %1916 = vmatprep.mubr.msk.f32.mxu0 %vm35_vm0, %v1277_v1 }
 0x6e0   :  { %1917 = vmatmul.mubr.msk.f32.vlgmr.msra.gmra.mrb[16].mxu0 %vm35_vm0, %v1900_v31 }
 0x6e1   :  { %v1907_v3 = vpop.f32.mrb[22].mxu1  ;;  %2035 = vmatpush3.bf16.msra.mxu0 %v2032_v62 }
 0x6e2   :  { %v1358_v4 = vpop.f32.mrb[23].mxu1  ;;  %2037 = vmatprep.subr.bf16.mxu0 %v2036_v2 }
 0x6e3   :  { %1919 = vmatprep.mubr.msk.f32.mxu0 %vm35_vm0, %v1358_v4 }
 0x6e4   :  { %1920 = vmatmul.mubr.msk.f32.gmra.mrb[18].mxu0 %vm35_vm0, %v1907_v3 }
 0x6e5   :  { %2039 = vmatpush3.bf16.msra.mxu0 %v2036_v2  ;;  %1930 = vmatprep.mubr.msk.f32.mxu0 %vm35_vm0, %v2330_v52 }
 0x6e8   :  { %1931 = vmatmul.mubr.msk.f32.vlgmr.msra.gmra.mrb[16].mxu0 %vm35_vm0, %v2328_v51 }
 0x6e9   :  { %1933 = vmatprep.mubr.msk.f32.mxu0 %vm35_vm0, %v2334_v18 }
 0x6ec   :  { %1934 = vmatmul.mubr.msk.f32.gmra.mrb[18].mxu0 %vm35_vm0, %v2332_v53 }
 0x7bb   :  { %v1932_v7 = vpop.f32.mrb[16].mxu0 }
 0x7bc   :  { %v1574_v8 = vadd.f32 %v1932_v7, %v1671_v6  ;;  %v1547_v9 = vpop.f32.mrb[17].mxu0 }
 0x7bd   :  { %v1573_v10 = vadd.f32 %v1671_v6, %v1547_v9 }
 0x7be   :  { %1578 = vst.msk [vmem:[#allocation2 + $0x8] sm:$0xff] %vm35_vm0, %v1574_v8 }
 0x7bf   :  { %1577 = vst.msk [vmem:[#allocation2] sm:$0xff] %vm35_vm0, %v1573_v10  ;;  %v1935_v51 = vpop.f32.mrb[18].mxu0 }
 0x7c0   :  { %v1576_v52 = vadd.f32 %v1935_v51, %v1671_v6  ;;  %v1557_v18 = vpop.f32.mrb[19].mxu0 }
 0x7c1   :  { %v1575_v11 = vadd.f32 %v1671_v6, %v1557_v18 }
 0x7c2   :  { %1580 = vst.msk [vmem:[#allocation2 + $0x18] sm:$0xff] %vm35_vm0, %v1576_v52 }
 0x7c3   :  { %1579 = vst.msk [vmem:[#allocation2 + $0x10] sm:$0xff] %vm35_vm0, %v1575_v11 }
 0x7c4   :  { %2090 = shalt.err (!%p2087_p4)
}
 0x7c5   :  { %s2091_s9 = scalar_lea.hbm %s2430_s7, 512 }
 0x7c6   :  { %p2092_p5 = scmp.ne.s32.totalorder %s2430_s7, %s2091_s9  ;;  %p2095_p6 = scmp.lt.u32.totalorder %s2091_s9, %s2430_s7 }
 0x7c8   :  { %p2097_p7 = pnand %p2095_p6, %p2092_p5 }
 0x7ca   :  { %2100 = shalt.err (!%p2097_p7)
}
 0x7cb   :  { %s2104_s12 = smov 128   ;;  %s2105_s13 = smov 8  }
 0x7cc   :  { %1592 = dma.vmem_to_hbm [thread:$0]  %s1587_s29, 512, %s2430_s7, [#allocation3], %s2104_s12, %s2104_s12, %s2105_s13  }
 0x7cd   :  { %2101 = dma.done.wait [#allocation3], 512  }
 0x7ce   :  { %2102 = vsyncadd [#allocation3], 4294966784 }
 0x7cf   :  { %1596 = vsyncpa [#allocation3], 1 }

</bundles_post_ra>
